<compile_context>
chip_gen: v7x
topology: tpu7x:2x2x1
jax: 0.10.0
libtpu: 0.0.40
codegen_flags: <defaults>
</compile_context>

<pallas_src>
import functools

import numpy as np
import jax
import jax.numpy as jnp
from jax.experimental import pallas as pl
from jax.experimental.pallas import tpu as pltpu

AA2AU = 1.8897261246257702   # Angstrom -> bohr   (mctc.units.AA2AU)
AU2EV = 27.211386245988      # hartree  -> eV     (mctc.units.AU2EV)


class ConvergenceError(RuntimeError):
    """Error raised when the optimization does not converge."""
    pass


class InvalidPositionsError(RuntimeError):
    """Error raised when the new positions are invalid."""
    pass


def _round_up(x, m):
    return ((x + m - 1) // m) * m


def _xtb_energy_kernel(pos_ref, z_ref, out_ref, *, a_i):
    """Classical pairwise-repulsion energy of one image for a block of reactions.

    pos_ref : (Bt, 1, 3, A)  positions in Angstrom, atoms on the lane axis
    z_ref   : (Bt, 1, 1, A)  atomic numbers as f32 (0 => padded atom)
    out_ref : (Bt, 1, 1, L)  per-system energy (hartree), broadcast over L lanes
    a_i     : static i (sublane) extent = round_up(real atom count, 8) <= A
    """
    bt = pos_ref.shape[0]
    a = pos_ref.shape[3]

    pos = pos_ref[:, 0] * AA2AU          # (Bt, 3, A), bohr
    z = z_ref[:, 0, 0]                   # (Bt, A)

    # Off-diagonal mask shared across reactions; i on sublanes, j on lanes.
    ii = jax.lax.broadcasted_iota(jnp.int32, (a_i, a), 0)
    jj = jax.lax.broadcasted_iota(jnp.int32, (a_i, a), 1)
    offdiag = (ii != jj)[None, :, :]     # (1, a_i, A)

    # Squared distances via direct coordinate differences on the VPU
    # (no MXU, no cancellation).
    # TODO(synk): for very large molecules (A_pad >= 256) the j (lane) axis of
    #             these (Bt, a_i, A) intermediates should be chunked with a
    #             lane-block loop to bound VMEM; not needed at these sizes.
    r2 = None
    for d in range(3):
        c = pos[:, d, :]                              # (Bt, A)
        dc = c[:, :a_i, None] - c[:, None, :]         # (Bt, a_i, A)
        sq = dc * dc
        r2 = sq if r2 is None else r2 + sq

    # Unconditional eps floor: coincident padded pairs stay finite and are
    # zeroed by z_j == 0 (lane factor) / z_i == 0 (per-atom factor below).
    r2 = jnp.maximum(r2, 1e-12)
    inv_r = jax.lax.rsqrt(r2)                         # EUP
    r = r2 * inv_r

    # z_i is factored out of the pairwise product and applied once per atom.
    zj = z[:, None, :]                                # (Bt, 1, A)
    pair = jnp.where(offdiag, zj * (jnp.exp(-r) * inv_r), 0.0)   # (Bt, a_i, A)

    e_atom = jnp.sum(pair, axis=2)                    # (Bt, a_i)   sum over j
    e_sys = 0.5 * jnp.sum(z[:, :a_i] * e_atom, axis=1, keepdims=True)  # (Bt, 1)

    # Single full-width unmasked store (lane-dense output tile).
    out_ref[...] = jnp.broadcast_to(e_sys.reshape(bt, 1, 1, 1), out_ref.shape)


def _vmem_limit_bytes():
    """Chip-aware scoped-VMEM limit: <=32 MiB on 64-MiB-VMEM chips (v7x),
    48 MiB on 128-MiB chips (v5e/v6e)."""
    cap = 128 * 1024 * 1024
    try:
        info = pltpu.get_tpu_info()
        cap = int(getattr(info, "vmem_capacity_bytes", cap))
    except Exception:
        pass
    return min(48 * 1024 * 1024, cap // 2)


def _choose_block_b(b, a_i, a_pad, tile_budget_bytes):
    """Largest reactions-per-step whose pairwise intermediates fit the budget.

    The elementwise chain materializes ~9 live (a_i, A_pad) f32 tensors per
    reaction (dc, sq, r2, inv_r, r, exp, zj-bcast, pair, mask) — Mosaic does
    not fuse them into one loop.
    """
    live_mult = 9
    per_rxn = live_mult * a_i * a_pad * 4
    bt = max(1, min(b, tile_budget_bytes // max(per_rxn, 1)))
    while b % bt != 0:
        bt -= 1
    return bt


def xtb_relative_energies(packed_positions, packed_numbers, a_real=None, *,
                          block_b=None):
    """packed_positions: (B, M1, 3, A_pad); packed_numbers: (B, M1, A_pad).

    a_real: number of real (non-padded) atoms (host int). Returns relative
    energies (E_image - E_reactant_reference) in eV, shape (B * (M1 - 1),).
    """
    b, m1, _, a_pad = packed_positions.shape
    m = m1 - 1

    if a_real is None:
        a_real = a_pad
    a_i = min(a_pad, _round_up(max(int(a_real), 1), 8))

    out_lanes = 128
    vmem_limit = _vmem_limit_bytes()
    bt = (_choose_block_b(b, a_i, a_pad, vmem_limit // 3)
          if block_b is None else block_b)
    grid = (b // bt, m1)

    pos_f = packed_positions.astype(jnp.float32)
    z_f = packed_numbers.astype(jnp.float32).reshape(b, m1, 1, a_pad)

    energies = pl.pallas_call(
        functools.partial(_xtb_energy_kernel, a_i=a_i),
        out_shape=jax.ShapeDtypeStruct((b, m1, 1, out_lanes), jnp.float32),
        grid=grid,
        in_specs=[
            pl.BlockSpec((bt, 1, 3, a_pad), lambda i, j: (i, j, 0, 0)),
            pl.BlockSpec((bt, 1, 1, a_pad), lambda i, j: (i, j, 0, 0)),
        ],
        out_specs=pl.BlockSpec((bt, 1, 1, out_lanes), lambda i, j: (i, j, 0, 0)),
        compiler_params=pltpu.CompilerParams(
            dimension_semantics=("parallel", "parallel"),
            vmem_limit_bytes=vmem_limit),
    )(pos_f, z_f)

    e_sys = energies[:, :, 0, 0]                      # (B, M1)  hartree
    rel = (e_sys[:, :m] - e_sys[:, m:m1]) * AU2EV     # (B, M)   eV
    return rel.reshape(b * m)


def _pack_batch(batch, new_positions):
    """Vectorized pack (single scatter per array) replacing the per-image loop.

    Returns pos_packed (B, M1, 3, A_pad) in Angstrom, z_packed (B, M1, A_pad),
    and a_max (max real atoms per system, host int)."""
    batch_index = np.asarray(batch["batch"])
    n_nodes = batch_index.shape[0]
    batch_size = int(np.asarray(batch["reaction_index"]).shape[0])
    num_images = (int(batch_index[-1]) + 1) // batch_size
    num_segments = batch_size * num_images

    counts = np.bincount(batch_index, minlength=num_segments)
    a_max = int(counts.max())
    a_pad = _round_up(a_max, 128)                     # atoms on 128 lanes
    starts = np.concatenate([[0], np.cumsum(counts)[:-1]])
    offsets = (np.arange(n_nodes) - starts[batch_index]).astype(np.int32)

    seg = jnp.asarray(batch_index, jnp.int32)
    off = jnp.asarray(offsets, jnp.int32)

    z_img = jnp.zeros((num_segments, a_pad), jnp.float32)
    z_img = z_img.at[seg, off].set(jnp.asarray(batch["atomic_numbers"], jnp.float32))
    pos_img = jnp.zeros((num_segments, a_pad, 3), jnp.float32)
    pos_img = pos_img.at[seg, off].set(jnp.asarray(new_positions, jnp.float32))
    pos_react = jnp.zeros((num_segments, a_pad, 3), jnp.float32)
    pos_react = pos_react.at[seg, off].set(
        jnp.asarray(batch["reactant_positions"], jnp.float32))

    z_img = z_img.reshape(batch_size, num_images, a_pad)
    pos_img = pos_img.reshape(batch_size, num_images, a_pad, 3)
    pos_react = pos_react.reshape(batch_size, num_images, a_pad, 3)

    # Extra "reactant reference" entry per reaction (last image's node range).
    z_packed = jnp.concatenate([z_img, z_img[:, -1:, :]], axis=1)              # (B, M1, A)
    pos_packed = jnp.concatenate([pos_img, pos_react[:, -1:, :, :]], axis=1)   # (B, M1, A, 3)

    # Atoms on the lane axis for the kernel: (B, M1, 3, A).
    pos_packed = jnp.transpose(pos_packed, (0, 1, 3, 2))
    return pos_packed, z_packed, a_max


def xtb_wrapper_forward(batch, new_positions):
    """Mirrors XTBWrapper.forward. `batch` is a dict of flat per-node arrays."""
    pos_packed, z_packed, a_max = _pack_batch(batch, new_positions)
    # TODO(synk): the original raises InvalidPositionsError on NaN positions only
    # inside dxtb's exception path; the host-syncing isnan() check is dropped here
    # (NaNs would simply propagate into the returned energies).
    # input_charges (all zero) are unused by the classical surrogate energy.
    return xtb_relative_energies(pos_packed, z_packed, a_real=a_max)


def _reference_rel_energies(pos_packed, z_packed):
    """Pure-NumPy (float64) reference of the surrogate + post-processing."""
    pos = np.asarray(pos_packed, np.float64) * AA2AU      # (B, M1, 3, A) bohr
    z = np.asarray(z_packed, np.float64)                  # (B, M1, A)
    b, m1, _, a = pos.shape
    diff = pos[:, :, :, :, None] - pos[:, :, :, None, :]  # (B, M1, 3, A, A)
    r2 = (diff * diff).sum(axis=2)
    mask = (z[:, :, :, None] > 0) & (z[:, :, None, :] > 0)
    mask &= ~np.eye(a, dtype=bool)[None, None]
    r = np.sqrt(np.maximum(r2, 1e-12))
    pair = np.where(mask, z[:, :, :, None] * z[:, :, None, :] * np.exp(-r) / r, 0.0)
    e = 0.5 * pair.sum(axis=(2, 3))                       # (B, M1) hartree
    return ((e[:, :-1] - e[:, -1:]) * AU2EV).reshape(-1)


if __name__ == "__main__":
    key = jax.random.PRNGKey(0)
    B = 2          # batch_size (reactions)
    M = 3          # num_images per reaction
    A = 8          # atoms per image

    k1, k2, k3 = jax.random.split(key, 3)
    # same molecule (same atomic numbers) for every image of a reaction
    z_per_reaction = jax.random.randint(k1, (B, A), 1, 9)          # 1..8
    atomic_numbers = jnp.tile(z_per_reaction[:, None, :], (1, M, 1)).reshape(-1)

    new_positions = 2.0 * jax.random.normal(k2, (B * M * A, 3), jnp.float32)
    reactant_positions = 2.0 * jax.random.normal(k3, (B * M * A, 3), jnp.float32)

    batch = {
        "batch": jnp.repeat(jnp.arange(B * M, dtype=jnp.int32), A),  # (B*M*A,)
        "reaction_index": jnp.arange(B, dtype=jnp.int32),
        "atomic_numbers": atomic_numbers,
        "reactant_positions": reactant_positions,
    }

    energies = xtb_wrapper_forward(batch, new_positions)   # (B*M,) eV
    jax.block_until_ready(energies)
    assert energies.shape == (B * M,)
    assert not bool(jnp.isnan(energies).any())

    pos_packed, z_packed, _ = _pack_batch(batch, new_positions)
    ref = _reference_rel_energies(np.asarray(pos_packed), np.asarray(z_packed))
    np.testing.assert_allclose(np.asarray(energies), ref, rtol=1e-3, atol=1e-2)

    print("KERNEL_OK")
</pallas_src>

<mosaic_0001>
module attributes {stable_mosaic.version = 11 : i64} {
  func.func @_xtb_energy_kernel(%arg0: i32, %arg1: i32, %arg2: memref<2x1x3x128xf32, #tpu.memory_space<vmem>>, %arg3: memref<2x1x1x128xf32, #tpu.memory_space<vmem>>, %arg4: memref<2x1x1x128xf32, #tpu.memory_space<vmem>>) attributes {dimension_semantics = [#tpu.dimension_semantics<parallel>, #tpu.dimension_semantics<parallel>], iteration_bounds = array<i64: 1, 4>, scalar_prefetch = 0 : i64, scratch_operands = 0 : i64, tpu.core_type = #tpu.core_type<tc>, window_params = [{transform_indices = @transform_0, window_bounds = array<i64: 2, 1, 3, 128>}, {transform_indices = @transform_1, window_bounds = array<i64: 2, 1, 1, 128>}, {transform_indices = @transform_2, window_bounds = array<i64: 2, 1, 1, 128>}]} {
    %c0 = arith.constant 0 : index
    %c0_0 = arith.constant 0 : index
    %c0_1 = arith.constant 0 : index
    %c0_2 = arith.constant 0 : index
    %0 = vector.load %arg2[%c0, %c0_0, %c0_1, %c0_2] : memref<2x1x3x128xf32, #tpu.memory_space<vmem>>, vector<2x1x3x128xf32>
    %1 = vector.shape_cast %0 : vector<2x1x3x128xf32> to vector<2x3x128xf32>
    %cst = arith.constant 1.88972616 : f32
    %2 = vector.broadcast %cst : f32 to vector<2x3x128xf32>
    %3 = arith.mulf %1, %2 : vector<2x3x128xf32>
    %c0_3 = arith.constant 0 : index
    %c0_4 = arith.constant 0 : index
    %c0_5 = arith.constant 0 : index
    %c0_6 = arith.constant 0 : index
    %4 = vector.load %arg3[%c0_3, %c0_4, %c0_5, %c0_6] : memref<2x1x1x128xf32, #tpu.memory_space<vmem>>, vector<2x1x1x128xf32>
    %5 = vector.shape_cast %4 : vector<2x1x1x128xf32> to vector<2x128xf32>
    %6 = tpu.iota {dimensions = array<i32: 0>} : vector<8x128xi32>
    %7 = tpu.iota {dimensions = array<i32: 1>} : vector<8x128xi32>
    %8 = arith.cmpi ne, %6, %7 : vector<8x128xi32>
    %9 = vector.shape_cast %8 : vector<8x128xi1> to vector<1x8x128xi1>
    %10 = vector.extract_strided_slice %3 {offsets = [0, 0, 0], sizes = [2, 1, 128], strides = [1, 1, 1]} : vector<2x3x128xf32> to vector<2x1x128xf32>
    %11 = vector.shape_cast %10 : vector<2x1x128xf32> to vector<2x128xf32>
    %12 = vector.extract_strided_slice %11 {offsets = [0, 0], sizes = [2, 8], strides = [1, 1]} : vector<2x128xf32> to vector<2x8xf32>
    %13 = vector.shape_cast %12 : vector<2x8xf32> to vector<2x8x1xf32>
    %14 = vector.shape_cast %11 : vector<2x128xf32> to vector<2x1x128xf32>
    %15 = vector.broadcast %13 : vector<2x8x1xf32> to vector<2x8x128xf32>
    %16 = vector.broadcast %14 : vector<2x1x128xf32> to vector<2x8x128xf32>
    %17 = arith.subf %15, %16 : vector<2x8x128xf32>
    %18 = arith.mulf %17, %17 : vector<2x8x128xf32>
    %19 = vector.extract_strided_slice %3 {offsets = [0, 1, 0], sizes = [2, 1, 128], strides = [1, 1, 1]} : vector<2x3x128xf32> to vector<2x1x128xf32>
    %20 = vector.shape_cast %19 : vector<2x1x128xf32> to vector<2x128xf32>
    %21 = vector.extract_strided_slice %20 {offsets = [0, 0], sizes = [2, 8], strides = [1, 1]} : vector<2x128xf32> to vector<2x8xf32>
    %22 = vector.shape_cast %21 : vector<2x8xf32> to vector<2x8x1xf32>
    %23 = vector.shape_cast %20 : vector<2x128xf32> to vector<2x1x128xf32>
    %24 = vector.broadcast %22 : vector<2x8x1xf32> to vector<2x8x128xf32>
    %25 = vector.broadcast %23 : vector<2x1x128xf32> to vector<2x8x128xf32>
    %26 = arith.subf %24, %25 : vector<2x8x128xf32>
    %27 = arith.mulf %26, %26 : vector<2x8x128xf32>
    %28 = arith.addf %18, %27 : vector<2x8x128xf32>
    %29 = vector.extract_strided_slice %3 {offsets = [0, 2, 0], sizes = [2, 1, 128], strides = [1, 1, 1]} : vector<2x3x128xf32> to vector<2x1x128xf32>
    %30 = vector.shape_cast %29 : vector<2x1x128xf32> to vector<2x128xf32>
    %31 = vector.extract_strided_slice %30 {offsets = [0, 0], sizes = [2, 8], strides = [1, 1]} : vector<2x128xf32> to vector<2x8xf32>
    %32 = vector.shape_cast %31 : vector<2x8xf32> to vector<2x8x1xf32>
    %33 = vector.shape_cast %30 : vector<2x128xf32> to vector<2x1x128xf32>
    %34 = vector.broadcast %32 : vector<2x8x1xf32> to vector<2x8x128xf32>
    %35 = vector.broadcast %33 : vector<2x1x128xf32> to vector<2x8x128xf32>
    %36 = arith.subf %34, %35 : vector<2x8x128xf32>
    %37 = arith.mulf %36, %36 : vector<2x8x128xf32>
    %38 = arith.addf %28, %37 : vector<2x8x128xf32>
    %cst_7 = arith.constant 9.99999996E-13 : f32
    %39 = vector.broadcast %cst_7 : f32 to vector<2x8x128xf32>
    %40 = arith.maximumf %38, %39 : vector<2x8x128xf32>
    %41 = math.rsqrt %40 : vector<2x8x128xf32>
    %42 = arith.mulf %40, %41 : vector<2x8x128xf32>
    %43 = vector.shape_cast %5 : vector<2x128xf32> to vector<2x1x128xf32>
    %cst_8 = arith.constant 0.000000e+00 : f32
    %44 = vector.broadcast %cst_8 : f32 to vector<2x8x128xf32>
    %45 = arith.subf %44, %42 : vector<2x8x128xf32>
    %46 = math.exp %45 : vector<2x8x128xf32>
    %47 = arith.mulf %46, %41 : vector<2x8x128xf32>
    %48 = vector.broadcast %43 : vector<2x1x128xf32> to vector<2x8x128xf32>
    %49 = arith.mulf %48, %47 : vector<2x8x128xf32>
    %cst_9 = arith.constant 0.000000e+00 : f32
    %50 = vector.shape_cast %9 : vector<1x8x128xi1> to vector<1x8x128xi1>
    %51 = vector.broadcast %50 : vector<1x8x128xi1> to vector<2x8x128xi1>
    %52 = vector.broadcast %cst_9 : f32 to vector<2x8x128xf32>
    %53 = arith.select %51, %49, %52 : vector<2x8x128xi1>, vector<2x8x128xf32>
    %cst_10 = arith.constant dense<0.000000e+00> : vector<2x8xf32>
    %54 = vector.multi_reduction <add>, %53, %cst_10 [2] : vector<2x8x128xf32> to vector<2x8xf32>
    %55 = vector.extract_strided_slice %5 {offsets = [0, 0], sizes = [2, 8], strides = [1, 1]} : vector<2x128xf32> to vector<2x8xf32>
    %56 = arith.mulf %55, %54 : vector<2x8xf32>
    %cst_11 = arith.constant dense<0.000000e+00> : vector<2xf32>
    %57 = vector.multi_reduction <add>, %56, %cst_11 [1] : vector<2x8xf32> to vector<2xf32>
    %58 = vector.shape_cast %57 : vector<2xf32> to vector<2x1xf32>
    %cst_12 = arith.constant 5.000000e-01 : f32
    %59 = vector.broadcast %cst_12 : f32 to vector<2x1xf32>
    %60 = arith.mulf %59, %58 : vector<2x1xf32>
    %61 = vector.shape_cast %60 : vector<2x1xf32> to vector<2x1x1x1xf32>
    %62 = vector.shape_cast %61 : vector<2x1x1x1xf32> to vector<2x1x1x1xf32>
    %63 = vector.broadcast %62 : vector<2x1x1x1xf32> to vector<2x1x1x128xf32>
    %c0_13 = arith.constant 0 : index
    %c0_14 = arith.constant 0 : index
    %c0_15 = arith.constant 0 : index
    %c0_16 = arith.constant 0 : index
    %64 = vector.load %arg4[%c0_13, %c0_14, %c0_15, %c0_16] : memref<2x1x1x128xf32, #tpu.memory_space<vmem>>, vector<2x1x1x128xf32>
    tpu.vector_store %arg4[%c0_13, %c0_14, %c0_15, %c0_16], %63 {strides = array<i32>} : memref<2x1x1x128xf32, #tpu.memory_space<vmem>>, vector<2x1x1x128xf32>,
    return
  }
  func.func @transform_0(%arg0: i32, %arg1: i32) -> (i32, i32, i32, i32) {
    %c0_i32 = arith.constant 0 : i32
    %c0_i32_0 = arith.constant 0 : i32
    %c0_i32_1 = arith.constant 0 : i32
    return %arg0, %arg1, %c0_i32, %c0_i32_0 : i32, i32, i32, i32
  }
  func.func @transform_1(%arg0: i32, %arg1: i32) -> (i32, i32, i32, i32) {
    %c0_i32 = arith.constant 0 : i32
    %c0_i32_0 = arith.constant 0 : i32
    %c0_i32_1 = arith.constant 0 : i32
    return %arg0, %arg1, %c0_i32, %c0_i32_0 : i32, i32, i32, i32
  }
  func.func @transform_2(%arg0: i32, %arg1: i32) -> (i32, i32, i32, i32) {
    %c0_i32 = arith.constant 0 : i32
    %c0_i32_0 = arith.constant 0 : i32
    %c0_i32_1 = arith.constant 0 : i32
    return %arg0, %arg1, %c0_i32, %c0_i32_0 : i32, i32, i32, i32
  }
}

</mosaic_0001>

<bundles_post_ra>
// kernel: tpu_custom_call.1
= control target key start
LH: loop header
LB: loop body
LE: loop exit
PB: predicated region body
PF: predicated region fallthrough
CT: control target
= control target key end

     0   :  { %7 = vsyncpa [#allocation5], 0  ;;  %s1127_s0 = inlined_call_operand.vmem [shape: f32[2,4,3,128], index: 0, kind: input, shape index: {}]   ;;  %s1128_s1 = inlined_call_operand.vmem [shape: f32[2,4,1,128], index: 1, kind: input, shape index: {}]   ;;  %s1129_s2 = inlined_call_operand.hbm [shape: f32[2,4,1,128], index: 2, kind: output, shape index: {}]  }
   0x1   :  { %9 = vsyncpa [#allocation5 + $0x1], 0  ;;  %s922_s9 = smov 0   ;;  %s924_s10 = smov 0  }
   0x2   :  { %s926_s11 = smov 0   ;;  %s928_s12 = smov 0  }
   0x3   :  { %s930_s13 = smov 0   ;;  %s932_s14 = smov 0  }
   0x4 LB: > { %s736_s15 = sadd.s32 4294967295, %s899_s14   ;;  %s737_s16 = sadd.s32 4294967294, %s899_s14   ;;  %s899_s14 = sphi %s932_s14, %s15_s14   ;;  %s895_s13 = sphi %s930_s13, %s1137_s13   ;;  %s891_s12 = sphi %s928_s12, %s1136_s12   ;;  %s887_s11 = sphi %s926_s11, %s1135_s11   ;;  %s883_s10 = sphi %s924_s10, %s1134_s10   ;;  %s879_s9 = sphi %s922_s9, %s1133_s9  }
   0x5   : > { %s24_s17 = sadd.s32 1, %s895_s13  ;;  %s36_s18 = sadd.s32 1, %s887_s11 }
   0x6   : > { %p25_p0 = scmp.ge.s32.totalorder %s24_s17, 4  ;;  %p43_p1 = scmp.ne.s32.totalorder %s887_s11, %s883_s10 }
   0x7   : > { %p44_p2 = scmp.eq.s32.totalorder %s899_s14, 0  ;;  %p103_p3 = scmp.eq.s32.totalorder %s736_s15, 3 }
   0x8   : > { %s1139_s17 = smov (%p25_p0, %s24_s17), 0  ;;  %p108_p6 = scmp.ne.s32.totalorder %s883_s10, %s879_s9 }
   0x9   : > { %p961_p4 = por %p44_p2, %p43_p1  ;;  %p965_p5 = por %p103_p3, %p43_p1 }
   0xa   : > { %s32_s21 = ssub.s32 %s895_s13, %s1139_s17  ;;  %p109_p8 = scmp.eq.s32.totalorder %s737_s16, 3 }
   0xb   : > { %p34_p7 = scmp.eq.s32.totalorder %s32_s21, 0  ;;  %p739_p10 = scmp.ge.s32.totalorder %s899_s14, 4 }
   0xc   : > { %p976_p9 = por %p109_p8, %p108_p6 }
   0xd   : > { %s974_s22 = scalar_select %p34_p7, %s887_s11, %s36_s18  }
   0xe   : > { %125 = sbr.rel (%p739_p10) target bundleno = 35 (0x23), region = 16 }
  0x15   : > { %128 = sbr.rel (!%p961_p4) target bundleno = 28 (0x1c), region = 20  ;;  %s130_s24 = sand.u32 (%p961_p4), 1, %s887_s11  }
  0x16   : > { %s741_s25 = sshll.u32 (%p961_p4), %s895_s13, 2  ;;  %s740_s26 = sshll.u32 (%p961_p4), %s130_s24, 3 }
  0x17   : > { %s137_s29 = scalar_lea.vmem (%p961_p4), %s1127_s0, %s741_s25  ;;  %s132_s30 = scalar_lea.vmem (%p961_p4), [#allocation2], %s740_s26 }
  0x18   : > { %v153_v0 = vld [vmem:[%s137_s29] sm:$0xf] (%p961_p4)  ;;  %v155_v1 = vld [vmem:[%s137_s29 + $0x10] sm:$0xf] (%p961_p4) }
  0x19   : > { %154 = vst [vmem:[%s132_s30] sm:$0xf] (%p961_p4), %v153_v0  ;;  %156 = vst [vmem:[%s132_s30 + $0x4] sm:$0xf] (%p961_p4), %v155_v1 }
  0x1c PF: > { %183 = sbr.rel (!%p961_p4) target bundleno = 35 (0x23), region = 61  ;;  %s185_s3 = sand.u32 (%p961_p4), 1, %s887_s11  }
  0x1d   : > { %s191_s6 = scalar_lea.vmem (%p961_p4), %s1128_s1, %s895_s13  ;;  %s742_s7 = sshll.u32 (%p961_p4), %s185_s3, 1 }
  0x1e   : > { %v207_v2 = vld [vmem:[%s191_s6] sm:$0x1] (%p961_p4)  ;;  %v209_v3 = vld [vmem:[%s191_s6 + $0x4] sm:$0x1] (%p961_p4)  ;;  %s187_s8 = scalar_lea.vmem (%p961_p4), [#allocation3], %s742_s7 }
  0x1f   : > { %208 = vst [vmem:[%s187_s8] sm:$0x1] (%p961_p4), %v207_v2  ;;  %210 = vst [vmem:[%s187_s8 + $0x1] sm:$0x1] (%p961_p4), %v209_v3 }
  0x23 PF: > { %p743_p11 = scmp.ge.s32.totalorder %s899_s14, 1  ;;  %p228_p12 = scmp.lt.s32.totalorder %s899_s14, 5 }
  0x25   : > { %p229_p13 = pnand %p743_p11, %p228_p12 }
  0x26   : > { %s998_s15 = sand.u32 (!%p229_p13), 1, %s883_s10   ;;  %v276_v4 = vlaneseq (!%p229_p13)  ;;  %v901_v0 = vmov (!%p229_p13), 0   ;;  %v902_v1 = vmov (!%p229_p13), 1966171168   ;;  %vm603_vm1 = vcmask (!%p229_p13), 58368   ;;  %s748_s26 = sshll.u32 (!%p229_p13), %s891_s12, 4 }
  0x27   : > { %232 = sbr.rel (%p229_p13) target bundleno = 674 (0x2a2), region = 95  ;;  %s744_s16 = sshll.u32 (!%p229_p13), %s998_s15, 3  ;;  %812 = vset.pattern.permute.xlu1 (!%p229_p13), %v901_v0  ;;  %811 = vset.pattern.permute.xlu0 (!%p229_p13), %v901_v0  ;;  %v446_v2 = vunpack.c.l.s4 (!%p229_p13), %v902_v1 }
  0x28   : > { %v1001_v5 = vshrl.u32 (!%p229_p13), %v276_v4, 7  ;;  %s237_s18 = scalar_lea.vmem (!%p229_p13), [#allocation2], %s744_s16  ;;  %s745_s19 = sshll.u32 (!%p229_p13), %s998_s15, 1  ;;  %v1025_v53 = vand.u32 (!%p229_p13), 127, %v276_v4 }
  0x29   : > { %v270_v6 = vld [vmem:[%s237_s18] sm:$0x7] (!%p229_p13)  ;;  %v271_v7 = vld [vmem:[%s237_s18 + $0x4] sm:$0x7] (!%p229_p13)  ;;  %s244_s21 = scalar_lea.vmem (!%p229_p13), [#allocation3], %s745_s19  ;;  %v447_v3 = vunpack.c.0.s8 (!%p229_p13), %v446_v2  ;;  %s266_s24 = scalar_lea.vmem (!%p229_p13), [#allocation4], %s745_s19 }
  0x2a   : > { %v272_v8 = vmul.f32 (!%p229_p13), 1.8897262, %v270_v6  ;;  %v1004_v9 = vsub.s32 (!%p229_p13), 1, %v1001_v5  ;;  %v1007_v10 = vsub.s32 (!%p229_p13), 0, %v1001_v5  ;;  %v273_v11 = vmul.f32 (!%p229_p13), 1.8897262, %v271_v7  ;;  %s1077_s29 = scalar_lea.hbm (!%p229_p13), %s1129_s2, %s748_s26 }
  0x2b   : > { %v1014_v16 = vsub.s32 (!%p229_p13), 2, %v1001_v5  ;;  %v1021_v51 = vld [vmem:[%s244_s21 + $0x1] sm:$0x1] (!%p229_p13)  ;;  %v1023_v52 = vld [vmem:[%s244_s21] sm:$0x1] (!%p229_p13)  ;;  %vm280_vm0 = vcmp.ne.s32.totalorder (!%p229_p13), %v1001_v5, %v1025_v53  ;;  %v391_v4 = vsub.s32 (!%p229_p13), 3, %v1001_v5 }
  0x2c   : > { %v302_v12 = vrot.slane (!%p229_p13), %v272_v8, %v1004_v9  ;;  %v284_v13 = vrot.slane (!%p229_p13), %v272_v8, %v1007_v10  ;;  %v309_v14 = vrot.slane (!%p229_p13), %v273_v11, %v1004_v9  ;;  %v291_v15 = vrot.slane (!%p229_p13), %v273_v11, %v1007_v10  ;;  %s637_s25 = sshll.u32 (!%p229_p13), %s266_s24, 4  ;;  %s622_s30 = scalar_lea.sflag (!%p229_p13), [#allocation5], %s998_s15  ;;  %s1072_s25 = int_to_ptr.vmem [resolvable:$true] %s637_s25 }
  0x2d   : > { %v329_v17 = vrot.slane (!%p229_p13), %v273_v11, %v1014_v16  ;;  %v322_v18 = vrot.slane (!%p229_p13), %v272_v8, %v1014_v16  ;;  %v362_v54 = vrot.slane (!%p229_p13), %v1021_v51, %v1007_v10  ;;  %v358_v56 = vrot.slane (!%p229_p13), %v1023_v52, %v1007_v10  ;;  %s821_s12 = scalar_lea.vmem (!%p229_p13), %s1072_s25, 32  ;;  %s903_s3 = smov (!%p229_p13), [#allocation4]  }
  0x2e   : > { %304 = vbcast.lane.b32.xlu1 %v302_v12, 256  ;;  %286 = vbcast.lane.b32.xlu0 %v284_v13, 256  ;;  %v395_v6 = vsub.s32 4, %v1001_v5  ;;  %v399_v7 = vsub.s32 5, %v1001_v5  ;;  %v403_v8 = vsub.s32 6, %v1001_v5  ;;  %v407_v11 = vsub.s32 7, %v1001_v5  ;;  %p822_p0 = scmp.ne.s32.totalorder %s1072_s25, %s821_s12 }
  0x2f   : > { %s825_s4 = sshll.u32 %s903_s3, 4  ;;  %s826_s4 = int_to_ptr.vmem [resolvable:$false] %s825_s4 }
  0x30   : > { %p823_p1 = pnand %p822_p0, %p965_p5  ;;  %s827_s5 = scalar_lea.vmem %s826_s4, 64 }
  0x31   : > { %p828_p3 = scmp.lt.s32.totalorder %s1072_s25, %s826_s4  ;;  %p829_p4 = scmp.lt.s32.totalorder %s827_s5, %s821_s12 }
  0x32   : > { %311 = vbcast.lane.b32.xlu1 %v309_v14, 256  ;;  %293 = vbcast.lane.b32.xlu0 %v291_v15, 256  ;;  %p824_p2 = pneg %p823_p1 }
  0x33   : > { %p830_p6 = por %p829_p4, %p828_p3 }
  0x35   : > { %p831_p7 = pnand %p830_p6, %p824_p2 }
  0x36   : > { %331 = vbcast.lane.b32.xlu1 %v329_v17, 256  ;;  %324 = vbcast.lane.b32.xlu0 %v322_v18, 256 }
  0xa0   : > { %v305_v19 = vpop.permute.xlu1 %304  ;;  %v287_v20 = vpop.permute.xlu0 %286 }
  0xa1   : > { %v313_v21 = vsub.f32 %v305_v19, %v302_v12  ;;  %v295_v22 = vsub.f32 %v287_v20, %v284_v13  ;;  %v1039_v12 = vsub.s32 %v447_v3, %v1001_v5 }
  0xa3   : > { %v315_v27 = vmul.f32 %v313_v21, %v313_v21  ;;  %v297_v28 = vmul.f32 %v295_v22, %v295_v22 }
  0xa4   : > { %v312_v23 = vpop.permute.xlu1 %311  ;;  %v294_v24 = vpop.permute.xlu0 %293 }
  0xa5   : > { %v314_v25 = vsub.f32 %v312_v23, %v309_v14  ;;  %v296_v26 = vsub.f32 %v294_v24, %v291_v15  ;;  %v317_v35 = vadd.f32 %v315_v27, %v297_v28 }
  0xa7   : > { %v316_v29 = vmul.f32 %v314_v25, %v314_v25  ;;  %v298_v30 = vmul.f32 %v296_v26, %v296_v26 }
  0xa8   : > { %v332_v31 = vpop.permute.xlu1 %331  ;;  %v325_v32 = vpop.permute.xlu0 %324 }
  0xa9   : > { %v334_v33 = vsub.f32 %v332_v31, %v329_v17  ;;  %v333_v34 = vsub.f32 %v325_v32, %v322_v18  ;;  %v318_v36 = vadd.f32 %v316_v29, %v298_v30 }
  0xab   : > { %v336_v37 = vmul.f32 %v334_v33, %v334_v33  ;;  %v335_v38 = vmul.f32 %v333_v34, %v333_v34 }
  0xad   : > { %v338_v39 = vadd.f32 %v336_v37, %v318_v36  ;;  %v337_v40 = vadd.f32 %v335_v38, %v317_v35 }
  0xaf   : > { %v340_v41 = vmax.f32 %v338_v39, 1e-12  ;;  %v339_v42 = vmax.f32 %v337_v40, 1e-12 }
  0xb1   : > { %813 = vrsqrt.f32 %v340_v41 }
  0xb2   : > { %815 = vrsqrt.f32 %v339_v42 }
  0xbb   : > { %v814_v43 = vpop.eup %813 }
  0xbc   : > { %v816_v44 = vpop.eup %815  ;;  %v344_v45 = vmul.f32 %v814_v43, %v340_v41 }
  0xbd   : > { %v343_v46 = vmul.f32 %v816_v44, %v339_v42 }
  0xbe   : > { %v346_v47 = vsub.f32 0.0, %v344_v45 }
  0xbf   : > { %v345_v48 = vsub.f32 0.0, %v343_v46 }
  0xc0   : > { %v349_v49 = vmul.f32 1.442695, %v346_v47 }
  0xc1   : > { %v347_v50 = vmul.f32 1.442695, %v345_v48 }
  0xc2   : > { %817 = vpow2.f32 %v349_v49 }
  0xc3   : > { %819 = vpow2.f32 %v347_v50 }
  0xcc   : > { %v818_v55 = vpop.eup %817 }
  0xcd   : > { %v820_v57 = vpop.eup %819  ;;  %v352_v58 = vmul.f32 %v818_v55, %v814_v43 }
  0xce   : > { %v351_v59 = vmul.f32 %v820_v57, %v816_v44 }
  0xcf   : > { %v366_v60 = vmul.f32 %v362_v54, %v352_v58 }
  0xd0   : > { %v365_v61 = vmul.f32 %v358_v56, %v351_v59 }
  0xd1   : > { %v370_v62 = vsel %vm280_vm0, %v366_v60, 0.0  ;;  %v547_v60 = vsub.s32 %v1025_v53, %v1001_v5 }
  0xd2   : > { %373 = vadd.xlane.f32.xlu1 %v370_v62  ;;  %v369_v63 = vsel %vm280_vm0, %v365_v61, 0.0 }
  0xd3   : > { %371 = vadd.xlane.f32.xlu0 %v369_v63 }
 0x15f   : > { %v374_v13 = vpop.xlane.xlu1 %373 }
 0x160   : > { %v372_v14 = vpop.xlane.xlu0 %371  ;;  %v412_v15 = vrot.slane %v374_v13, %v1007_v10  ;;  %v416_v17 = vrot.slane %v374_v13, %v1004_v9  ;;  %v420_v18 = vrot.slane %v374_v13, %v1014_v16  ;;  %v424_v19 = vrot.slane %v374_v13, %v391_v4 }
 0x161   : > { %v428_v20 = vrot.slane %v374_v13, %v395_v6  ;;  %v432_v21 = vrot.slane %v374_v13, %v399_v7  ;;  %v436_v22 = vrot.slane %v374_v13, %v403_v8  ;;  %v440_v23 = vrot.slane %v374_v13, %v407_v11 }
 0x162   : > { %v490_v24 = vcombine.low %v412_v15, %v416_v17  ;;  %v491_v25 = vcombine.low %v420_v18, %v424_v19  ;;  %v380_v26 = vrot.slane %v372_v14, %v1007_v10  ;;  %v384_v27 = vrot.slane %v372_v14, %v1004_v9 }
 0x163   : > { %v492_v28 = vcombine.low %v428_v20, %v432_v21  ;;  %v493_v29 = vcombine.low %v436_v22, %v440_v23  ;;  %v388_v30 = vrot.slane %v372_v14, %v1014_v16  ;;  %v392_v31 = vrot.slane %v372_v14, %v391_v4 }
 0x164   : > { %v500_v32 = vrot.slane %v490_v24, %v1039_v12  ;;  %v507_v33 = vrot.slane %v491_v25, %v1039_v12  ;;  %v396_v34 = vrot.slane %v372_v14, %v395_v6  ;;  %v400_v35 = vrot.slane %v372_v14, %v399_v7 }
 0x165   : > { %v514_v36 = vrot.slane %v492_v28, %v1039_v12  ;;  %v521_v37 = vrot.slane %v493_v29, %v1039_v12  ;;  %v404_v38 = vrot.slane %v372_v14, %v403_v8  ;;  %v408_v39 = vrot.slane %v372_v14, %v407_v11 }
 0x166   : > { %v522_v40 = vcombine.low %v500_v32, %v507_v33  ;;  %v441_v41 = vcombine.low %v380_v26, %v384_v27  ;;  %v442_v42 = vcombine.low %v388_v30, %v392_v31  ;;  %v443_v43 = vcombine.low %v396_v34, %v400_v35 }
 0x167   : > { %v523_v44 = vcombine.low %v514_v36, %v521_v37  ;;  %v444_v45 = vcombine.low %v404_v38, %v408_v39 }
 0x168   : > { %v530_v16 = vrot.slane %v522_v40, %v1039_v12  ;;  %v451_v46 = vrot.slane %v441_v41, %v1039_v12  ;;  %v458_v47 = vrot.slane %v442_v42, %v1039_v12  ;;  %v465_v48 = vrot.slane %v443_v43, %v1039_v12 }
 0x169   : > { %v537_v49 = vrot.slane %v523_v44, %v1039_v12  ;;  %v472_v50 = vrot.slane %v444_v45, %v1039_v12 }
 0x16a   : > { %v473_v54 = vcombine.low %v451_v46, %v458_v47 }
 0x16b   : > { %v538_v55 = vcombine.low %v530_v16, %v537_v49  ;;  %v474_v56 = vcombine.low %v465_v48, %v472_v50 }
 0x16c   : > { %v481_v57 = vrot.slane %v473_v54, %v1039_v12 }
 0x16d   : > { %543 = vperm.xlu1 %812, %v538_v55   ;;  %v488_v58 = vrot.slane %v474_v56, %v1039_v12 }
 0x16f   : > { %v489_v59 = vcombine.low %v481_v57, %v488_v58 }
 0x171   : > { %540 = vperm.xlu0 %811, %v489_v59  }
 0x1ec   : > { %v544_v61 = vpop.permute.xlu1 %543 }
 0x1ed   : > { %v552_v62 = vrot.slane %v544_v61, %v547_v60 }
 0x1ef   : > { %v573_v63 = vrot.slane %v552_v62, %v1039_v12 }
 0x1f0   : > { %v541_v0 = vpop.permute.xlu0 %540 }
 0x1f1   : > { %v580_v1 = vrot.slane %v573_v63, %v1039_v12  ;;  %v548_v2 = vrot.slane %v541_v0, %v547_v60 }
 0x1f3   : > { %v559_v3 = vrot.slane %v548_v2, %v1039_v12  ;;  %v584_v4 = vmul.f32 %v580_v1, %v1021_v51 }
 0x1f5   : > { %v566_v6 = vrot.slane %v559_v3, %v1039_v12 }
 0x1f7   : > { %v583_v7 = vmul.f32 %v566_v6, %v1023_v52 }
 0x1f9   : > { %v587_v8 = vcombine.low %v583_v7, %v584_v4 }
 0x1fb   : > { %v594_v5 = vrot.slane %v587_v8, %v1039_v12 }
 0x1fd   : > { %v601_v53 = vrot.slane %v594_v5, %v1039_v12 }
 0x1ff   : > { %v604_v11 = vsel %vm603_vm1, %v601_v53, 0.0 }
 0x200   : > { %605 = vadd.xlane.f32.xlu1 %v604_v11 }
 0x28d   : > { %v606_v13 = vpop.xlane.xlu1 %605 }
 0x28e   : > { %v607_v51 = vmul.f32 0.5, %v606_v13 }
 0x290   : > { %v612_v52 = vrot.slane %v607_v51, %v1007_v10  ;;  %v616_v12 = vrot.slane %v607_v51, %v1004_v9 }
 0x292   : > { %619 = vst [vmem:[%s266_s24] sm:$0x1] %v612_v52  ;;  %620 = vst [vmem:[%s266_s24 + $0x1] sm:$0x1] %v616_v12 }
 0x293   : > { %834 = shalt.err (!%p831_p7)
}
 0x294   : > { %s835_s6 = scalar_lea.hbm %s1077_s29, 32  ;;  %s839_s16 = scalar_lea.hbm %s1129_s2, 128 }
 0x295   : > { %p836_p8 = scmp.ne.s32.totalorder %s1077_s29, %s835_s6  ;;  %p840_p12 = scmp.lt.u32.totalorder %s1077_s29, %s1129_s2 }
 0x296   : > { %p841_p13 = scmp.lt.u32.totalorder %s839_s16, %s835_s6  ;;  %p843_p1 = scmp.lt.u32.totalorder %s835_s6, %s1077_s29 }
 0x297   : > { %p837_p10 = pnand %p836_p8, %p965_p5 }
 0x298   : > { %p842_p0 = por %p841_p13, %p840_p12 }
 0x299   : > { %p838_p11 = pneg %p837_p10 }
 0x29a   : > { %p844_p2 = por %p843_p1, %p842_p0 }
 0x29c   : > { %p845_p3 = pnand %p844_p2, %p838_p11 }
 0x29e   : > { %848 = shalt.err (!%p845_p3)
}
 0x29f   : > { %s904_s21 = smov 16   ;;  %s905_s24 = smov 64  }
 0x2a0   : > { %s906_s26 = smov 1  }
 0x2a1   : > { %751 = dma.vmem_to_hbm [thread:$0]  (%p965_p5), %s1072_s25, 32, %s1077_s29, %s622_s30, %s904_s21, %s905_s24, %s906_s26  }
 0x2a2 PF: > { %p757_p4 = scmp.ge.s32.totalorder %s899_s14, 2  ;;  %s652_s27 = sand.u32 1, %s879_s9  }
 0x2a3   : > { %s653_s28 = scalar_lea.sflag [#allocation5], %s652_s27 }
 0x2a4   : > { %p754_p6 = pnand %p757_p4, %p976_p9 }
 0x2a6   : > { %874 = dma.done.wait (!%p754_p6), %s653_s28, 32  }
 0x2a7   : > { %876 = vsyncadd (!%p754_p6), %s653_s28, 4294967264  ;;  %s15_s14 = sadd.s32 1, %s899_s14   ;;  %s1133_s9 = smov %s883_s10 }
 0x2a8   : > { %p12_p7 = scmp.ge.s32.totalorder %s15_s14, 6   ;;  %s1134_s10 = smov %s887_s11 }
 0x2a9   : > { %s1135_s11 = smov %s974_s22  ;;  %s1136_s12 = smov %s895_s13 }
 0x2aa   : > { %s1137_s13 = smov %s1139_s17  ;;  %14 = sbr.rel (!%p12_p7) target bundleno = 4 (0x4), region = 151 }
 0x2b1   :  { %658 = vsyncpa [#allocation5], 1 }
 0x2b2   :  { %660 = vsyncpa [#allocation5 + $0x1], 1 }

</bundles_post_ra>
